<compile_context>
chip_gen: v7x
topology: tpu7x:2x2x1
jax: 0.10.0
libtpu: 0.0.40
codegen_flags: <defaults>
</compile_context>

<pallas_src>
import functools

import numpy as np
import jax
import jax.numpy as jnp
from jax import lax
from jax.experimental import pallas as pl
from jax.experimental.pallas import tpu as pltpu

_LANES = 128  # MXU/vreg lane width; fc2 weights are padded to this many columns


def _qatt_kernel(qlens_ref, qr2_ref, w1b_ref, w2p_ref, b2_ref, out_ref,
                 *, B, L, D):
    """Single-step kernel over the whole (padded) batch.

    qlens_ref : SMEM (B,)   int32  -- scalar-prefetched valid lengths
    qr2_ref   : VMEM (B*L, 2D)     -- [qr | qr] duplicated along lanes
    w1b_ref   : VMEM (D+1, H)      -- fc1 weights with bias row appended
    w2p_ref   : VMEM (H, 128)      -- fc2 weights zero-padded to 128 lanes
    b2_ref    : SMEM (2,)   f32    -- fc2 bias
    out_ref   : VMEM (B, 2D)       -- [glimpse0 | glimpse1]
    """
    D2 = 2 * D
    qr2 = qr2_ref[...]                                        # (B*L, 2D)

    # ---- fc1 + ReLU: one MXU matmul for the whole batch; bias row folded ----
    h = jnp.dot(qr2[:, :D], w1b_ref[:D, :],
                preferred_element_type=jnp.float32)           # (B*L, H)
    h = jnp.maximum(h + w1b_ref[D:D + 1, :], 0.0)

    # ---- fc2 on the MXU against lane-padded weights (keeps the XLU free) ----
    att = jnp.dot(h, w2p_ref[...],
                  preferred_element_type=jnp.float32)         # (B*L, 128)
    att0 = (att[:, 0:1] + b2_ref[0]).reshape(B, L, 1)         # glimpse-0 logits
    att1 = (att[:, 1:2] + b2_ref[1]).reshape(B, L, 1)         # glimpse-1 logits

    # ---- validity mask from qlens: 2-D iotas in the (B, L, 1) view ----
    pos = lax.broadcasted_iota(jnp.int32, (B, L, 1), 1)       # position in seq
    bidx = lax.broadcasted_iota(jnp.int32, (B, L, 1), 0)      # batch index
    lens = jnp.full((B, L, 1), qlens_ref[B - 1], dtype=jnp.int32)
    for b in range(B - 1):          # B static & tiny: one VALU select per row
        lens = jnp.where(bidx == b, qlens_ref[b], lens)
    maskf = (pos < lens).astype(jnp.float32)                  # (B, L, 1)

    # ---- masked softmax pieces (plain exp, exactly like the reference) ----
    e0 = jnp.exp(att0) * maskf                                # (B, L, 1)
    e1 = jnp.exp(att1) * maskf
    inv0 = 1.0 / jnp.sum(e0, axis=1)                          # (B, 1)  exact recip
    inv1 = 1.0 / jnp.sum(e1, axis=1)                          # (B, 1)

    # ---- glimpse-weighted sums: ONE sublane reduce over [qr | qr] ----
    lane3 = lax.broadcasted_iota(jnp.int32, (1, 1, D2), 2)
    wgt = jnp.where(lane3 < D, e0, e1)                        # (B, L, 2D)
    num = jnp.sum(wgt * qr2.reshape(B, L, D2), axis=1)        # (B, 2D)

    lane2 = lax.broadcasted_iota(jnp.int32, (1, D2), 1)
    inv = jnp.where(lane2 < D, inv0, inv1)                    # (B, 2D)

    # Single store of the whole output slab (glimpse0 | glimpse1).
    out_ref[...] = num * inv


@jax.jit
def qatt_cf(qr, qlens, w1, b1, w2, b2):
    """qr: (B, L, D) f32, qlens: (B,) i32, w1: (D, H), b1: (1, H),
    w2: (H, 2), b2: (1, 2).  Returns (B, 2*D) f32."""
    B, L, D = qr.shape
    H = w1.shape[1]

    # Pad L to a multiple of 8 so in-kernel (B*L, X) -> (B, L, X) reshapes stay
    # pure sublane re-grouping; the mask zeroes the padded rows automatically.
    Lp = ((L + 7) // 8) * 8
    if Lp != L:
        qr = jnp.pad(qr, ((0, 0), (0, Lp - L), (0, 0)))
    BL = B * Lp

    # Wrapper-side (once per call, fused under jit; static in real deployments):
    qr_flat = qr.reshape(BL, D)
    qr2 = jnp.concatenate([qr_flat, qr_flat], axis=1)          # (BL, 2D)
    w1b = jnp.concatenate([w1, b1.reshape(1, H)], axis=0)      # (D+1, H)
    w2p = jnp.zeros((H, _LANES), jnp.float32).at[:, :2].set(w2)  # (H, 128)
    b2v = b2.reshape(2).astype(jnp.float32)                    # (2,) -> SMEM

    kernel = functools.partial(_qatt_kernel, B=B, L=Lp, D=D)
    out = pl.pallas_call(
        kernel,
        out_shape=jax.ShapeDtypeStruct((B, 2 * D), jnp.float32),
        grid_spec=pltpu.PrefetchScalarGridSpec(
            num_scalar_prefetch=1,          # qlens -> SMEM
            grid=(1,),                      # whole (toy-sized) batch in one step
            in_specs=[
                pl.BlockSpec((BL, 2 * D), lambda i, qlens: (0, 0)),
                pl.BlockSpec((D + 1, H), lambda i, qlens: (0, 0)),
                pl.BlockSpec((H, _LANES), lambda i, qlens: (0, 0)),
                pl.BlockSpec(memory_space=pltpu.MemorySpace.SMEM),  # b2 scalars
            ],
            out_specs=pl.BlockSpec((B, 2 * D), lambda i, qlens: (0, 0)),
        ),
        compiler_params=pltpu.CompilerParams(
            dimension_semantics=("arbitrary",)),
    )(qlens, qr2, w1b, w2p, b2v)
    return out


def _reference(qr, qlens, w1, b1, w2, b2):
    """Pure-JAX reference mirroring the PyTorch forward."""
    B, L, D = qr.shape
    x = qr.reshape(-1, D)
    x = jnp.maximum(x @ w1 + b1, 0.0)
    x = (x @ w2 + b2).reshape(B, L, 2)
    mask = (jnp.arange(L)[None, :, None] < qlens[:, None, None]).astype(x.dtype)
    e = jnp.exp(x) * mask
    att = e / jnp.sum(e, axis=1, keepdims=True)                 # (B, L, 2)
    outs = [jnp.sum(att[:, :, g:g + 1] * qr, axis=1) for g in range(2)]
    return jnp.concatenate(outs, axis=1)                        # (B, 2*D)


if __name__ == "__main__":
    B, qr_len, qr_size, hidden = 2, 8, 32, 512

    key = jax.random.PRNGKey(0)
    k_qr, k_w1, k_b1, k_w2, k_b2 = jax.random.split(key, 5)

    qr = jax.random.normal(k_qr, (B, qr_len, qr_size), dtype=jnp.float32)
    qlens = jnp.array([qr_len, 5], dtype=jnp.int32)             # valid lengths per batch

    # deterministic synthetic parameters (Linear(qr_size, 512), Linear(512, 2)),
    # stored pre-transposed as (in, out)
    w1 = jax.random.normal(k_w1, (qr_size, hidden), dtype=jnp.float32) * 0.05
    b1 = jax.random.normal(k_b1, (1, hidden), dtype=jnp.float32) * 0.05
    w2 = jax.random.normal(k_w2, (hidden, 2), dtype=jnp.float32) * 0.05
    b2 = jax.random.normal(k_b2, (1, 2), dtype=jnp.float32) * 0.05

    out = qatt_cf(qr, qlens, w1, b1, w2, b2)
    out = jax.block_until_ready(out)

    ref = jax.block_until_ready(_reference(qr, qlens, w1, b1, w2, b2))
    np.testing.assert_allclose(np.asarray(out), np.asarray(ref), rtol=1e-4, atol=1e-5)

    print("KERNEL_OK")
</pallas_src>

<mosaic_0001>
module attributes {stable_mosaic.version = 11 : i64} {
  func.func @_qatt_kernel(%arg0: i32, %arg1: memref<2xi32, #tpu.memory_space<smem>>, %arg2: memref<16x64xf32, #tpu.memory_space<vmem>>, %arg3: memref<33x512xf32, #tpu.memory_space<vmem>>, %arg4: memref<512x128xf32, #tpu.memory_space<vmem>>, %arg5: memref<2xf32, #tpu.memory_space<smem>>, %arg6: memref<2x64xf32, #tpu.memory_space<vmem>>) attributes {dimension_semantics = [#tpu.dimension_semantics<arbitrary>], iteration_bounds = array<i64: 1>, scalar_prefetch = 1 : i64, scratch_operands = 0 : i64, tpu.core_type = #tpu.core_type<tc>, window_params = [{pipeline_mode = #tpu.pipeline_mode<synchronous>, transform_indices = @transform_0, window_bounds = array<i64: 16, 64>}, {pipeline_mode = #tpu.pipeline_mode<synchronous>, transform_indices = @transform_1, window_bounds = array<i64: 33, 512>}, {pipeline_mode = #tpu.pipeline_mode<synchronous>, transform_indices = @transform_2, window_bounds = array<i64: 512, 128>}, {transform_indices = @transform_3, window_bounds = array<i64: 2>}, {pipeline_mode = #tpu.pipeline_mode<synchronous>, transform_indices = @transform_4, window_bounds = array<i64: 2, 64>}]} {
    %c0 = arith.constant 0 : index
    %c0_0 = arith.constant 0 : index
    %0 = vector.load %arg2[%c0, %c0_0] : memref<16x64xf32, #tpu.memory_space<vmem>>, vector<16x64xf32>
    %1 = vector.extract_strided_slice %0 {offsets = [0, 0], sizes = [16, 32], strides = [1, 1]} : vector<16x64xf32> to vector<16x32xf32>
    %c0_1 = arith.constant 0 : index
    %c0_2 = arith.constant 0 : index
    %2 = vector.load %arg3[%c0_1, %c0_2] : memref<33x512xf32, #tpu.memory_space<vmem>>, vector<32x512xf32>
    %cst = arith.constant dense<0.000000e+00> : vector<16x512xf32>
    %3 = tpu.matmul %1, %2, %cst {dimension_numbers = #tpu.dot_dimension_numbers<[1], [0], [0], [1], [0, 0, 1, 1], [], []>} : vector<16x32xf32>, vector<32x512xf32>, vector<16x512xf32> -> vector<16x512xf32>
    %c32 = arith.constant 32 : index
    %c0_3 = arith.constant 0 : index
    %4 = vector.load %arg3[%c32, %c0_3] : memref<33x512xf32, #tpu.memory_space<vmem>>, vector<1x512xf32>
    %5 = vector.broadcast %4 : vector<1x512xf32> to vector<16x512xf32>
    %6 = arith.addf %3, %5 : vector<16x512xf32>
    %cst_4 = arith.constant 0.000000e+00 : f32
    %7 = vector.broadcast %cst_4 : f32 to vector<16x512xf32>
    %8 = arith.maximumf %6, %7 : vector<16x512xf32>
    %c0_5 = arith.constant 0 : index
    %c0_6 = arith.constant 0 : index
    %9 = vector.load %arg4[%c0_5, %c0_6] : memref<512x128xf32, #tpu.memory_space<vmem>>, vector<512x128xf32>
    %cst_7 = arith.constant dense<0.000000e+00> : vector<16x128xf32>
    %10 = tpu.matmul %8, %9, %cst_7 {dimension_numbers = #tpu.dot_dimension_numbers<[1], [0], [0], [1], [0, 0, 1, 1], [], []>} : vector<16x512xf32>, vector<512x128xf32>, vector<16x128xf32> -> vector<16x128xf32>
    %11 = vector.extract_strided_slice %10 {offsets = [0, 0], sizes = [16, 1], strides = [1, 1]} : vector<16x128xf32> to vector<16x1xf32>
    %c0_8 = arith.constant 0 : index
    %12 = memref.load %arg5[%c0_8] : memref<2xf32, #tpu.memory_space<smem>>
    %13 = vector.broadcast %12 : f32 to vector<16x1xf32>
    %14 = arith.addf %11, %13 : vector<16x1xf32>
    %15 = vector.shape_cast %14 : vector<16x1xf32> to vector<2x8x1xf32>
    %16 = vector.extract_strided_slice %10 {offsets = [0, 1], sizes = [16, 1], strides = [1, 1]} : vector<16x128xf32> to vector<16x1xf32>
    %c1 = arith.constant 1 : index
    %17 = memref.load %arg5[%c1] : memref<2xf32, #tpu.memory_space<smem>>
    %18 = vector.broadcast %17 : f32 to vector<16x1xf32>
    %19 = arith.addf %16, %18 : vector<16x1xf32>
    %20 = vector.shape_cast %19 : vector<16x1xf32> to vector<2x8x1xf32>
    %21 = tpu.iota {dimensions = array<i32: 1>} : vector<2x8x1xi32>
    %22 = tpu.iota {dimensions = array<i32: 0>} : vector<2x8x1xi32>
    %c1_9 = arith.constant 1 : index
    %23 = memref.load %arg1[%c1_9] : memref<2xi32, #tpu.memory_space<smem>>
    %24 = vector.broadcast %23 : i32 to vector<2x8x1xi32>
    %c0_i32 = arith.constant 0 : i32
    %25 = vector.broadcast %c0_i32 : i32 to vector<2x8x1xi32>
    %26 = arith.cmpi eq, %22, %25 : vector<2x8x1xi32>
    %c0_10 = arith.constant 0 : index
    %27 = memref.load %arg1[%c0_10] : memref<2xi32, #tpu.memory_space<smem>>
    %28 = vector.broadcast %27 : i32 to vector<2x8x1xi32>
    %29 = arith.select %26, %28, %24 : vector<2x8x1xi1>, vector<2x8x1xi32>
    %30 = arith.cmpi slt, %21, %29 : vector<2x8x1xi32>
    %31 = arith.extui %30 : vector<2x8x1xi1> to vector<2x8x1xi32>
    %32 = arith.sitofp %31 : vector<2x8x1xi32> to vector<2x8x1xf32>
    %33 = math.exp %15 : vector<2x8x1xf32>
    %34 = arith.mulf %33, %32 : vector<2x8x1xf32>
    %35 = math.exp %20 : vector<2x8x1xf32>
    %36 = arith.mulf %35, %32 : vector<2x8x1xf32>
    %cst_11 = arith.constant dense<0.000000e+00> : vector<2x1xf32>
    %37 = vector.multi_reduction <add>, %34, %cst_11 [1] : vector<2x8x1xf32> to vector<2x1xf32>
    %cst_12 = arith.constant 1.000000e+00 : f32
    %38 = vector.broadcast %cst_12 : f32 to vector<2x1xf32>
    %39 = arith.divf %38, %37 : vector<2x1xf32>
    %cst_13 = arith.constant dense<0.000000e+00> : vector<2x1xf32>
    %40 = vector.multi_reduction <add>, %36, %cst_13 [1] : vector<2x8x1xf32> to vector<2x1xf32>
    %cst_14 = arith.constant 1.000000e+00 : f32
    %41 = vector.broadcast %cst_14 : f32 to vector<2x1xf32>
    %42 = arith.divf %41, %40 : vector<2x1xf32>
    %43 = tpu.iota {dimensions = array<i32: 2>} : vector<1x1x64xi32>
    %c32_i32 = arith.constant 32 : i32
    %44 = vector.broadcast %c32_i32 : i32 to vector<1x1x64xi32>
    %45 = arith.cmpi slt, %43, %44 : vector<1x1x64xi32>
    %46 = vector.shape_cast %45 : vector<1x1x64xi1> to vector<1x1x64xi1>
    %47 = vector.broadcast %46 : vector<1x1x64xi1> to vector<2x8x64xi1>
    %48 = vector.shape_cast %34 : vector<2x8x1xf32> to vector<2x8x1xf32>
    %49 = vector.broadcast %48 : vector<2x8x1xf32> to vector<2x8x64xf32>
    %50 = vector.shape_cast %36 : vector<2x8x1xf32> to vector<2x8x1xf32>
    %51 = vector.broadcast %50 : vector<2x8x1xf32> to vector<2x8x64xf32>
    %52 = arith.select %47, %49, %51 : vector<2x8x64xi1>, vector<2x8x64xf32>
    %53 = vector.shape_cast %0 : vector<16x64xf32> to vector<2x8x64xf32>
    %54 = arith.mulf %52, %53 : vector<2x8x64xf32>
    %cst_15 = arith.constant dense<0.000000e+00> : vector<2x64xf32>
    %55 = vector.multi_reduction <add>, %54, %cst_15 [1] : vector<2x8x64xf32> to vector<2x64xf32>
    %56 = tpu.iota {dimensions = array<i32: 1>} : vector<1x64xi32>
    %c32_i32_16 = arith.constant 32 : i32
    %57 = vector.broadcast %c32_i32_16 : i32 to vector<1x64xi32>
    %58 = arith.cmpi slt, %56, %57 : vector<1x64xi32>
    %59 = vector.shape_cast %58 : vector<1x64xi1> to vector<1x64xi1>
    %60 = vector.broadcast %59 : vector<1x64xi1> to vector<2x64xi1>
    %61 = vector.shape_cast %39 : vector<2x1xf32> to vector<2x1xf32>
    %62 = vector.broadcast %61 : vector<2x1xf32> to vector<2x64xf32>
    %63 = vector.shape_cast %42 : vector<2x1xf32> to vector<2x1xf32>
    %64 = vector.broadcast %63 : vector<2x1xf32> to vector<2x64xf32>
    %65 = arith.select %60, %62, %64 : vector<2x64xi1>, vector<2x64xf32>
    %66 = arith.mulf %55, %65 : vector<2x64xf32>
    %c0_17 = arith.constant 0 : index
    %c0_18 = arith.constant 0 : index
    %67 = vector.load %arg6[%c0_17, %c0_18] : memref<2x64xf32, #tpu.memory_space<vmem>>, vector<2x64xf32>
    tpu.vector_store %arg6[%c0_17, %c0_18], %66 {strides = array<i32>} : memref<2x64xf32, #tpu.memory_space<vmem>>, vector<2x64xf32>,
    return
  }
  func.func @transform_0(%arg0: i32, %arg1: memref<2xi32, #tpu.memory_space<smem>>) -> (i32, i32) {
    %c0_i32 = arith.constant 0 : i32
    %c0_i32_0 = arith.constant 0 : i32
    %c0_i32_1 = arith.constant 0 : i32
    return %c0_i32, %c0_i32_0 : i32, i32
  }
  func.func @transform_1(%arg0: i32, %arg1: memref<2xi32, #tpu.memory_space<smem>>) -> (i32, i32) {
    %c0_i32 = arith.constant 0 : i32
    %c0_i32_0 = arith.constant 0 : i32
    %c0_i32_1 = arith.constant 0 : i32
    return %c0_i32, %c0_i32_0 : i32, i32
  }
  func.func @transform_2(%arg0: i32, %arg1: memref<2xi32, #tpu.memory_space<smem>>) -> (i32, i32) {
    %c0_i32 = arith.constant 0 : i32
    %c0_i32_0 = arith.constant 0 : i32
    %c0_i32_1 = arith.constant 0 : i32
    return %c0_i32, %c0_i32_0 : i32, i32
  }
  func.func @transform_3(%arg0: i32, %arg1: memref<2xi32, #tpu.memory_space<smem>>) -> i32 {
    %c0_i32 = arith.constant 0 : i32
    %c0_i32_0 = arith.constant 0 : i32
    return %c0_i32 : i32
  }
  func.func @transform_4(%arg0: i32, %arg1: memref<2xi32, #tpu.memory_space<smem>>) -> (i32, i32) {
    %c0_i32 = arith.constant 0 : i32
    %c0_i32_0 = arith.constant 0 : i32
    %c0_i32_1 = arith.constant 0 : i32
    return %c0_i32, %c0_i32_0 : i32, i32
  }
}

</mosaic_0001>

<bundles_post_ra>
// kernel: qatt_cf.1
= control target key start
LH: loop header
LB: loop body
LE: loop exit
PB: predicated region body
PF: predicated region fallthrough
CT: control target
= control target key end

     0   :  { %s1220_s0 = inlined_call_operand.vmem [shape: s32[2], index: 0, kind: input, shape index: {}]   ;;  %s1221_s1 = inlined_call_operand.vmem [shape: f32[16,64], index: 1, kind: input, shape index: {}]   ;;  %s1222_s2 = inlined_call_operand.vmem [shape: f32[33,512], index: 2, kind: input, shape index: {}]   ;;  %s1223_s3 = inlined_call_operand.vmem [shape: f32[512,128], index: 3, kind: input, shape index: {}]   ;;  %s1224_s4 = inlined_call_operand.vmem [shape: f32[2], index: 4, kind: input, shape index: {}]   ;;  %s1225_s5 = inlined_call_operand.hbm [shape: f32[2,64], index: 5, kind: output, shape index: {}]  }
   0x1   :  { %s10_s20 = sshll.u32 %s1220_s0, 4  ;;  %s11_s20 = int_to_ptr.vmem [resolvable:$true] %s10_s20 }
   0x2   :  { %s821_s21 = scalar_lea.vmem %s11_s20, 16  ;;  %p826_p1 = scmp.lt.s32.totalorder %s11_s20, %s11_s20 }
   0x3   :  { %p822_p0 = scmp.ne.s32.totalorder %s11_s20, %s821_s21  ;;  %p827_p2 = scmp.lt.s32.totalorder %s821_s21, %s821_s21 }
   0x5   :  { %p828_p3 = por %p827_p2, %p826_p1 }
   0x7   :  { %p829_p4 = pnand %p828_p3, %p822_p0 }
   0x9   :  { %832 = shalt.err (!%p829_p4)  }
   0xa   :  { %s873_s22 = smov [#allocation3]  }
   0xb   :  { %13 = dma.vmem_to_smem %s11_s20, 16, %s873_s22, [#allocation2] }
   0xc   :  { %867 = dma.done.wait [#allocation2], 16 }
   0xd   :  { %868 = vsyncadd [#allocation2], 4294967280 }
   0xe   :  { %15 = sfence }
   0xf   :  { %16 = vsyncpa [#allocation6], 0 }
  0x10   :  { %17 = vsyncpa [#allocation5], 0  ;;  %s30_s25 = sshll.u32 %s1224_s4, 4  ;;  %s31_s25 = int_to_ptr.vmem [resolvable:$true] %s30_s25 }
  0x11   :  { %s833_s0 = scalar_lea.vmem %s31_s25, 16  ;;  %p838_p6 = scmp.lt.s32.totalorder %s31_s25, %s31_s25 }
  0x12   :  { %p834_p5 = scmp.ne.s32.totalorder %s31_s25, %s833_s0  ;;  %p839_p7 = scmp.lt.s32.totalorder %s833_s0, %s833_s0 }
  0x14   :  { %p840_p8 = por %p839_p7, %p838_p6 }
  0x16   :  { %p841_p9 = pnand %p840_p8, %p834_p5 }
  0x18   :  { %844 = shalt.err (!%p841_p9)
}
  0x19   :  { %s874_s26 = smov [#allocation4]  }
  0x1a   :  { %33 = dma.vmem_to_smem %s31_s25, 16, %s874_s26, [#allocation6]  }
  0x1b   :  { %869 = dma.done.wait [#allocation6], 16  }
  0x1c   :  { %870 = vsyncadd [#allocation6], 4294967280 }
  0x1d   :  { %37 = sfence }
  0x1e   :  { %v41_v0 = vld [vmem:[%s1222_s2 + $0x8] sm:$0xff]  ;;  %v43_v2 = vld [vmem:[%s1222_s2 + $0x18] sm:$0xff]  ;;  %v40_v5 = vld [vmem:[%s1222_s2] sm:$0xff]  ;;  %v875_v7 = vmov 0.0   ;;  %vm79_vm0 = vcmask 261120   ;;  %s474_s27 = sld [smem:[#allocation3]] }
  0x1f   :  { %v45_v1 = vld [vmem:[%s1222_s2 + $0x28] sm:$0xff]  ;;  %v47_v4 = vld [vmem:[%s1222_s2 + $0x38] sm:$0xff]  ;;  %v44_v6 = vld [vmem:[%s1222_s2 + $0x20] sm:$0xff]  ;;  %150 = vmatprep.mubr.f32.mxu0 %v875_v7  ;;  %227 = vmatprep.mubr.f32.mxu1 %v875_v7  ;;  %s632_s28 = sld [smem:[#allocation3 + $0x1]]  ;;  %vm494_vm3 = vcmask 7168   ;;  %vm513_vm4 = vcmask 15368  }
  0x20   :  { %v711_v3 = vpack.c.bf16 %v45_v1, %v41_v0  ;;  %v719_v8 = vpack.c.bf16 %v47_v4, %v43_v2  ;;  %v713_v9 = vpack.c.bf16 %v44_v6, %v40_v5  ;;  %v42_v10 = vld [vmem:[%s1222_s2 + $0x10] sm:$0xff]  ;;  %v49_v12 = vld [vmem:[%s1222_s2 + $0x48] sm:$0xff]  ;;  %v51_v15 = vld [vmem:[%s1222_s2 + $0x58] sm:$0xff]  ;;  %vm561_vm6 = vcmask 523264   ;;  %s878_s29 = smov [#allocation7]  }
  0x21   :  { %v46_v11 = vld [vmem:[%s1222_s2 + $0x30] sm:$0xff]  ;;  %v53_v14 = vld [vmem:[%s1222_s2 + $0x68] sm:$0xff]  ;;  %v55_v16 = vld [vmem:[%s1222_s2 + $0x78] sm:$0xff]  ;;  %vm592_vm7 = vcmask 1041409   ;;  %s617_s30 = sshll.u32 %s878_s29, 4  ;;  %vm609_vm8 = vcmask 517120   ;;  %s618_s30 = int_to_ptr.vmem [resolvable:$true] %s617_s30 }
  0x22   :  { %712 = vmatprep.subr.bf16.mxu0 %v711_v3  ;;  %v721_v13 = vpack.c.bf16 %v46_v11, %v42_v10  ;;  %720 = vmatprep.subr.bf16.mxu1 %v719_v8  ;;  %v715_v17 = vpack.c.bf16 %v53_v14, %v49_v12  ;;  %v723_v18 = vpack.c.bf16 %v55_v16, %v51_v15  ;;  %v48_v19 = vld [vmem:[%s1222_s2 + $0x40] sm:$0xff]  ;;  %v50_v21 = vld [vmem:[%s1222_s2 + $0x50] sm:$0xff]  ;;  %v265_v27 = vld [vmem:[%s1223_s3 + $0x88] sm:$0xff]  ;;  %s845_s4 = scalar_lea.vmem %s618_s30, 32  ;;  %p850_p11 = scmp.lt.s32.totalorder %s618_s30, %s618_s30 }
  0x23   :  { %714 = vmatpush1.bf16.msra.mxu0 %v713_v9  ;;  %v52_v20 = vld [vmem:[%s1222_s2 + $0x60] sm:$0xff]  ;;  %v54_v23 = vld [vmem:[%s1222_s2 + $0x70] sm:$0xff]  ;;  %v297_v30 = vld [vmem:[%s1223_s3 + $0x188] sm:$0xff]  ;;  %p846_p10 = scmp.ne.s32.totalorder %s618_s30, %s845_s4  ;;  %p851_p12 = scmp.lt.s32.totalorder %s845_s4, %s845_s4 }
  0x24   :  { %722 = vmatpush1.bf16.msra.mxu1 %v721_v13  ;;  %v717_v22 = vpack.c.bf16 %v52_v20, %v48_v19  ;;  %716 = vmatprep.subr.bf16.mxu0 %v715_v17  ;;  %v725_v24 = vpack.c.bf16 %v54_v23, %v50_v21  ;;  %v968_v25 = vld [vmem:[%s1221_s1] sm:$0xff]  ;;  %v249_v32 = vld [vmem:[%s1223_s3 + $0x8] sm:$0xff]  ;;  %v266_v36 = vld [vmem:[%s1223_s3 + $0x90] sm:$0xff] }
  0x25   :  { %724 = vmatprep.subr.bf16.mxu1 %v723_v18  ;;  %v264_v26 = vld [vmem:[%s1223_s3 + $0x80] sm:$0xff]  ;;  %v281_v35 = vld [vmem:[%s1223_s3 + $0x108] sm:$0xff]  ;;  %v267_v38 = vld [vmem:[%s1223_s3 + $0x98] sm:$0xff]  ;;  %p852_p13 = por %p851_p12, %p850_p11 }
  0x26   :  { %v296_v28 = vld [vmem:[%s1223_s3 + $0x180] sm:$0xff]  ;;  %v727_v29 = vpack.c.bf16 %v265_v27, %v264_v26  ;;  %v298_v39 = vld [vmem:[%s1223_s3 + $0x190] sm:$0xff]  ;;  %v299_v40 = vld [vmem:[%s1223_s3 + $0x198] sm:$0xff]  ;;  %v731_v42 = vpack.c.bf16 %v267_v38, %v266_v36 }
  0x27   :  { %v248_v31 = vld [vmem:[%s1223_s3] sm:$0xff]  ;;  %718 = vmatpush1.bf16.msra.mxu0 %v717_v22  ;;  %v759_v33 = vpack.c.bf16 %v297_v30, %v296_v28  ;;  %v250_v43 = vld [vmem:[%s1223_s3 + $0x10] sm:$0xff]  ;;  %v251_v44 = vld [vmem:[%s1223_s3 + $0x18] sm:$0xff]  ;;  %v763_v46 = vpack.c.bf16 %v299_v40, %v298_v39  ;;  %p853_p0 = pnand %p852_p13, %p846_p10 }
  0x28   :  { %v280_v34 = vld [vmem:[%s1223_s3 + $0x100] sm:$0xff]  ;;  %726 = vmatpush1.bf16.msra.mxu1 %v725_v24  ;;  %728 = vmatprep.subr.bf16.mxu0 %v727_v29  ;;  %v729_v37 = vpack.c.bf16 %v249_v32, %v248_v31  ;;  %v282_v45 = vld [vmem:[%s1223_s3 + $0x110] sm:$0xff]  ;;  %v283_v47 = vld [vmem:[%s1223_s3 + $0x118] sm:$0xff]  ;;  %v733_v53 = vpack.c.bf16 %v251_v44, %v250_v43 }
  0x29   :  { %760 = vmatprep.subr.bf16.mxu1 %v759_v33  ;;  %v761_v41 = vpack.c.bf16 %v281_v35, %v280_v34  ;;  %v268_v48 = vld [vmem:[%s1223_s3 + $0xa0] sm:$0xff]  ;;  %v269_v49 = vld [vmem:[%s1223_s3 + $0xa8] sm:$0xff]  ;;  %v765_v54 = vpack.c.bf16 %v283_v47, %v282_v45  ;;  %v270_v61 = vld [vmem:[%s1223_s3 + $0xb0] sm:$0xff] }
  0x2a   :  { %627 = vmatmul.mubr.msk.f32.vlgmr.msra.gmra.mrb[0].mxu0 %vm79_vm0, %v968_v25  ;;  %v1032_v50 = vld [vmem:[%s1221_s1 + $0x8] sm:$0xff]  ;;  %v300_v51 = vld [vmem:[%s1223_s3 + $0x1a0] sm:$0xff]  ;;  %v735_v55 = vpack.c.bf16 %v269_v49, %v268_v48  ;;  %v271_v62 = vld [vmem:[%s1223_s3 + $0xb8] sm:$0xff] }
  0x2b   :  { %629 = vmatmul.mubr.msk.f32.vlgmr.msra.gmra.mrb[0].mxu1 %vm79_vm0, %v968_v25  ;;  %156 = vmatprep.mubr.f32.mxu0 %v875_v7  ;;  %v301_v52 = vld [vmem:[%s1223_s3 + $0x1a8] sm:$0xff]  ;;  %v252_v56 = vld [vmem:[%s1223_s3 + $0x20] sm:$0xff]  ;;  %v302_v63 = vld [vmem:[%s1223_s3 + $0x1b0] sm:$0xff]  ;;  %v739_v3 = vpack.c.bf16 %v271_v62, %v270_v61  ;;  %v59_v62 = vlaneseq }
  0x2c   :  { %233 = vmatprep.mubr.f32.mxu1 %v875_v7  ;;  %730 = vmatpush3.bf16.msra.mxu0 %v729_v37  ;;  %v253_v57 = vld [vmem:[%s1223_s3 + $0x28] sm:$0xff]  ;;  %v284_v58 = vld [vmem:[%s1223_s3 + $0x120] sm:$0xff]  ;;  %v767_v59 = vpack.c.bf16 %v301_v52, %v300_v51  ;;  %v303_v0 = vld [vmem:[%s1223_s3 + $0x1b8] sm:$0xff] }
  0x2d   :  { %762 = vmatpush3.bf16.msra.mxu1 %v761_v41  ;;  %732 = vmatprep.subr.bf16.mxu0 %v731_v42  ;;  %v285_v60 = vld [vmem:[%s1223_s3 + $0x128] sm:$0xff]  ;;  %v737_v1 = vpack.c.bf16 %v253_v57, %v252_v56  ;;  %v254_v4 = vld [vmem:[%s1223_s3 + $0x30] sm:$0xff]  ;;  %v255_v5 = vld [vmem:[%s1223_s3 + $0x38] sm:$0xff]  ;;  %v771_v8 = vpack.c.bf16 %v303_v0, %v302_v63  ;;  %v1178_v63 = vshrl.u32 %v59_v62, 7 }
  0x2e   :  { %628 = vmatmul.mubr.msk.f32.gmra.mrb[2].mxu0 %vm79_vm0, %v1032_v50  ;;  %764 = vmatprep.subr.bf16.mxu1 %v763_v46  ;;  %v769_v2 = vpack.c.bf16 %v285_v60, %v284_v58  ;;  %v286_v6 = vld [vmem:[%s1223_s3 + $0x130] sm:$0xff]  ;;  %v287_v9 = vld [vmem:[%s1223_s3 + $0x138] sm:$0xff]  ;;  %v272_v10 = vld [vmem:[%s1223_s3 + $0xc0] sm:$0xff]  ;;  %v741_v14 = vpack.c.bf16 %v255_v5, %v254_v4 }
  0x2f   :  { %630 = vmatmul.mubr.msk.f32.gmra.mrb[2].mxu1 %vm79_vm0, %v1032_v50  ;;  %v273_v11 = vld [vmem:[%s1223_s3 + $0xc8] sm:$0xff]  ;;  %v304_v12 = vld [vmem:[%s1223_s3 + $0x1c0] sm:$0xff]  ;;  %v773_v15 = vpack.c.bf16 %v287_v9, %v286_v6  ;;  %v274_v22 = vld [vmem:[%s1223_s3 + $0xd0] sm:$0xff]  ;;  %v61_v0 = vsub.s32 0, %v1178_v63  ;;  %v73_v4 = vsub.s32 3, %v1178_v63 }
  0x30   :  { %734 = vmatpush3.bf16.msra.mxu0 %v733_v53  ;;  %v305_v13 = vld [vmem:[%s1223_s3 + $0x1c8] sm:$0xff]  ;;  %v743_v16 = vpack.c.bf16 %v273_v11, %v272_v10  ;;  %v256_v17 = vld [vmem:[%s1223_s3 + $0x40] sm:$0xff]  ;;  %v275_v23 = vld [vmem:[%s1223_s3 + $0xd8] sm:$0xff] }
  0x31   :  { %766 = vmatpush3.bf16.msra.mxu1 %v765_v54  ;;  %736 = vmatprep.subr.bf16.mxu0 %v735_v55  ;;  %v257_v18 = vld [vmem:[%s1223_s3 + $0x48] sm:$0xff]  ;;  %v288_v19 = vld [vmem:[%s1223_s3 + $0x140] sm:$0xff]  ;;  %v775_v20 = vpack.c.bf16 %v305_v13, %v304_v12  ;;  %v306_v24 = vld [vmem:[%s1223_s3 + $0x1d0] sm:$0xff]  ;;  %v747_v29 = vpack.c.bf16 %v275_v23, %v274_v22 }
  0x32   :  { %768 = vmatprep.subr.bf16.mxu1 %v767_v59  ;;  %v289_v21 = vld [vmem:[%s1223_s3 + $0x148] sm:$0xff]  ;;  %v307_v26 = vld [vmem:[%s1223_s3 + $0x1d8] sm:$0xff]  ;;  %v745_v27 = vpack.c.bf16 %v257_v18, %v256_v17  ;;  %v258_v30 = vld [vmem:[%s1223_s3 + $0x50] sm:$0xff] }
  0x33   :  { %v777_v28 = vpack.c.bf16 %v289_v21, %v288_v19  ;;  %v259_v31 = vld [vmem:[%s1223_s3 + $0x58] sm:$0xff]  ;;  %v290_v32 = vld [vmem:[%s1223_s3 + $0x150] sm:$0xff]  ;;  %v779_v33 = vpack.c.bf16 %v307_v26, %v306_v24  ;;  %v276_v35 = vld [vmem:[%s1223_s3 + $0xe0] sm:$0xff] }
  0x34   :  { %738 = vmatpush3.bf16.msra.mxu0 %v737_v1  ;;  %v291_v34 = vld [vmem:[%s1223_s3 + $0x158] sm:$0xff]  ;;  %v277_v36 = vld [vmem:[%s1223_s3 + $0xe8] sm:$0xff]  ;;  %v308_v37 = vld [vmem:[%s1223_s3 + $0x1e0] sm:$0xff]  ;;  %v749_v39 = vpack.c.bf16 %v259_v31, %v258_v30 }
  0x35   :  { %770 = vmatpush3.bf16.msra.mxu1 %v769_v2  ;;  %740 = vmatprep.subr.bf16.mxu0 %v739_v3  ;;  %v309_v38 = vld [vmem:[%s1223_s3 + $0x1e8] sm:$0xff]  ;;  %v781_v40 = vpack.c.bf16 %v291_v34, %v290_v32  ;;  %v751_v41 = vpack.c.bf16 %v277_v36, %v276_v35  ;;  %v260_v43 = vld [vmem:[%s1223_s3 + $0x60] sm:$0xff]  ;;  %v278_v49 = vld [vmem:[%s1223_s3 + $0xf0] sm:$0xff]  ;;  %v69_v2 = vsub.s32 2, %v1178_v63  ;;  %v65_v3 = vsub.s32 1, %v1178_v63 }
  0x36   :  { %772 = vmatprep.subr.bf16.mxu1 %v771_v8  ;;  %v783_v42 = vpack.c.bf16 %v309_v38, %v308_v37  ;;  %v261_v44 = vld [vmem:[%s1223_s3 + $0x68] sm:$0xff]  ;;  %v292_v45 = vld [vmem:[%s1223_s3 + $0x160] sm:$0xff]  ;;  %v279_v51 = vld [vmem:[%s1223_s3 + $0xf8] sm:$0xff]  ;;  %v876_v35 = vmov 0  }
  0x37   :  { %v753_v46 = vpack.c.bf16 %v261_v44, %v260_v43  ;;  %v293_v47 = vld [vmem:[%s1223_s3 + $0x168] sm:$0xff]  ;;  %v310_v52 = vld [vmem:[%s1223_s3 + $0x1f0] sm:$0xff]  ;;  %v755_v53 = vpack.c.bf16 %v279_v51, %v278_v49  ;;  %v311_v54 = vld [vmem:[%s1223_s3 + $0x1f8] sm:$0xff]  ;;  %799 = vset.pattern.permute.xlu1 %v876_v35  ;;  %797 = vset.pattern.permute.xlu0 %v876_v35 }
  0x38   :  { %742 = vmatpush3.bf16.msra.mxu0 %v741_v14  ;;  %v785_v48 = vpack.c.bf16 %v293_v47, %v292_v45  ;;  %v262_v55 = vld [vmem:[%s1223_s3 + $0x70] sm:$0xff]  ;;  %v263_v56 = vld [vmem:[%s1223_s3 + $0x78] sm:$0xff]  ;;  %v787_v57 = vpack.c.bf16 %v311_v54, %v310_v52 }
  0x39   :  { %774 = vmatpush3.bf16.msra.mxu1 %v773_v15  ;;  %744 = vmatprep.subr.bf16.mxu0 %v743_v16  ;;  %v757_v58 = vpack.c.bf16 %v263_v56, %v262_v55  ;;  %v294_v59 = vld [vmem:[%s1223_s3 + $0x170] sm:$0xff]  ;;  %v295_v60 = vld [vmem:[%s1223_s3 + $0x178] sm:$0xff]  ;;  %s631_s3 = sld [smem:[#allocation4 + $0x1]] }
  0x3a   :  { %776 = vmatprep.subr.bf16.mxu1 %v775_v20  ;;  %v789_v61 = vpack.c.bf16 %v295_v60, %v294_v59  ;;  %v626_v1 = vld [vmem:[%s1222_s2 + $0x80] ss:$8 sm:$0xf]  ;;  %s462_s2 = sld [smem:[#allocation4]] }
  0x3b   :  { %v62_v5 = vrot.slane %v626_v1, %v61_v0  ;;  %v70_v6 = vrot.slane %v626_v1, %v69_v2  ;;  %v66_v8 = vrot.slane %v626_v1, %v65_v3  ;;  %v74_v9 = vrot.slane %v626_v1, %v73_v4 }
  0x3c   :  { %746 = vmatpush3.bf16.msra.mxu0 %v745_v27  ;;  %v473_v0 = vstv %s632_s28 }
  0x3d   :  { %778 = vmatpush3.bf16.msra.mxu1 %v777_v28  ;;  %748 = vmatprep.subr.bf16.mxu0 %v747_v29  ;;  %vm477_vm2 = vcmp.lt.s32.totalorder %v1178_v63, %v473_v0 }
  0x3e   :  { %780 = vmatprep.subr.bf16.mxu1 %v779_v33 }
  0x3f   :  { %v467_v43 = vstv %s631_s3 }
  0x40   :  { %750 = vmatpush3.bf16.msra.mxu0 %v749_v39 }
  0x41   :  { %782 = vmatpush3.bf16.msra.mxu1 %v781_v40  ;;  %752 = vmatprep.subr.bf16.mxu0 %v751_v41 }
  0x42   :  { %784 = vmatprep.subr.bf16.mxu1 %v783_v42  ;;  %v463_v42 = vstv %s462_s2 }
  0x44   :  { %754 = vmatpush3.bf16.msra.mxu0 %v753_v46 }
  0x45   :  { %786 = vmatpush3.bf16.msra.mxu1 %v785_v48  ;;  %756 = vmatprep.subr.bf16.mxu0 %v755_v53 }
  0x46   :  { %788 = vmatprep.subr.bf16.mxu1 %v787_v57 }
  0x48   :  { %758 = vmatpush3.bf16.msra.mxu0 %v757_v58 }
  0x49   :  { %790 = vmatpush3.bf16.msra.mxu1 %v789_v61  ;;  %v475_v61 = vstv %s474_s27 }
  0x4a   :  { %vm476_vm1 = vcmp.lt.s32.totalorder %v1178_v63, %v475_v61 }
  0x4b   :  { %v633_v1 = vsel %vm476_vm1, 1.0, %v875_v7 }
  0xfd   :  { %v152_v10 = vpop.f32.mrb[0].mxu0 }
  0xfe   :  { %v153_v11 = vadd.f32 %v152_v10, %v62_v5  ;;  %v229_v12 = vpop.f32.mrb[0].mxu1  ;;  %v154_v13 = vpop.f32.mrb[1].mxu0 }
  0xff   :  { %v230_v14 = vadd.f32 %v229_v12, %v70_v6  ;;  %v155_v15 = vadd.f32 %v154_v13, %v66_v8  ;;  %v231_v16 = vpop.f32.mrb[1].mxu1 }
 0x100   :  { %v232_v17 = vadd.f32 %v231_v16, %v74_v9  ;;  %v240_v20 = vmax.f32 %v153_v11, 0.0 }
 0x101   :  { %v241_v18 = vmax.f32 %v155_v15, 0.0  ;;  %v158_v19 = vpop.f32.mrb[2].mxu0  ;;  %v242_v26 = vmax.f32 %v230_v14, 0.0 }
 0x102   :  { %v243_v21 = vmax.f32 %v232_v17, 0.0  ;;  %v159_v22 = vadd.f32 %v158_v19, %v62_v5  ;;  %v235_v23 = vpop.f32.mrb[2].mxu1  ;;  %v160_v24 = vpop.f32.mrb[3].mxu0 }
 0x103   :  { %v236_v27 = vadd.f32 %v235_v23, %v70_v6  ;;  %v161_v28 = vadd.f32 %v160_v24, %v66_v8  ;;  %v237_v29 = vpop.f32.mrb[3].mxu1  ;;  %376 = vmatprep.mubr.f32.mxu0 %v241_v18  ;;  %v634_v6 = vsel %vm477_vm2, 1.0, %v875_v7  ;;  %v877_v18 = vmov 1  }
 0x104   :  { %v244_v30 = vmax.f32 %v159_v22, 0.0  ;;  %v238_v31 = vadd.f32 %v237_v29, %v74_v9  ;;  %451 = vmatprep.mubr.f32.mxu1 %v243_v21  ;;  %377 = vmatmul.mubr.f32.vlgmr.msra.gmra.mrb[4].mxu0 %v240_v20 }
 0x105   :  { %v246_v32 = vmax.f32 %v236_v27, 0.0  ;;  %v245_v33 = vmax.f32 %v161_v28, 0.0  ;;  %452 = vmatmul.mubr.f32.vlgmr.msra.gmra.mrb[4].mxu1 %v242_v26 }
 0x106   :  { %v247_v34 = vmax.f32 %v238_v31, 0.0 }
 0x107   :  { %381 = vmatprep.mubr.f32.mxu0 %v245_v33 }
 0x108   :  { %456 = vmatprep.mubr.f32.mxu1 %v247_v34  ;;  %382 = vmatmul.mubr.f32.gmra.mrb[6].mxu0 %v244_v30 }
 0x109   :  { %457 = vmatmul.mubr.f32.gmra.mrb[6].mxu1 %v246_v32 }
 0x1d7   :  { %v667_v36 = vpop.f32.mrb[4].mxu0 }
 0x1d8   :  { %v705_v37 = vpop.f32.mrb[4].mxu1  ;;  %v668_v38 = vpop.f32.mrb[5].mxu0 }
 0x1d9   :  { %v669_v39 = vadd.f32 %v668_v38, %v667_v36  ;;  %v706_v40 = vpop.f32.mrb[5].mxu1 }
 0x1da   :  { %v707_v41 = vadd.f32 %v706_v40, %v705_v37 }
 0x1db   :  { %v670_v44 = vpop.f32.mrb[6].mxu0 }
 0x1dc   :  { %v454_v45 = vadd.f32 %v707_v41, %v669_v39  ;;  %v708_v46 = vpop.f32.mrb[6].mxu1  ;;  %v671_v47 = vpop.f32.mrb[7].mxu0 }
 0x1dd   :  { %v672_v48 = vadd.f32 %v671_v47, %v670_v44  ;;  %v709_v49 = vpop.f32.mrb[7].mxu1 }
 0x1de   :  { %v464_v51 = vadd.f32 %v463_v42, %v454_v45  ;;  %v468_v52 = vadd.f32 %v467_v43, %v454_v45  ;;  %v710_v53 = vadd.f32 %v709_v49, %v708_v46 }
 0x1e0   :  { %v482_v54 = vmul.f32 1.442695, %v464_v51  ;;  %v488_v55 = vmul.f32 1.442695, %v468_v52  ;;  %v459_v56 = vadd.f32 %v710_v53, %v672_v48 }
 0x1e2   :  { %805 = vpow2.f32 %v482_v54  ;;  %v465_v57 = vadd.f32 %v463_v42, %v459_v56  ;;  %v469_v58 = vadd.f32 %v467_v43, %v459_v56 }
 0x1e3   :  { %807 = vpow2.f32 %v488_v55 }
 0x1e4   :  { %v484_v59 = vmul.f32 1.442695, %v465_v57  ;;  %v490_v60 = vmul.f32 1.442695, %v469_v58 }
 0x1e6   :  { %809 = vpow2.f32 %v484_v59 }
 0x1e7   :  { %811 = vpow2.f32 %v490_v60 }
 0x1ec   :  { %v806_v2 = vpop.eup %805 }
 0x1ed   :  { %v808_v3 = vpop.eup %807  ;;  %v486_v4 = vmul.f32 %v806_v2, %v633_v1 }
 0x1ee   :  { %v492_v5 = vmul.f32 %v808_v3, %v633_v1 }
 0x1ef   :  { %539 = vperm.xlu1 %799, %v486_v4   ;;  %v495_v8 = vsel %vm494_vm3, %v486_v4, 0.0 }
 0x1f0   :  { %v810_v9 = vpop.eup %809  ;;  %v514_v10 = vsel %vm513_vm4, %v492_v5, 0.0  ;;  %v496_v11 = vrot.slane %v495_v8, 4 }
 0x1f1   :  { %v812_v12 = vpop.eup %811  ;;  %v515_v13 = vrot.slane %v514_v10, 4  ;;  %v487_v14 = vmul.f32 %v810_v9, %v634_v6 }
 0x1f2   :  { %v497_v15 = vadd.f32 %v496_v11, %v495_v8  ;;  %v493_v63 = vmul.f32 %v812_v12, %v634_v6 }
 0x1f3   :  { %v516_v16 = vadd.f32 %v515_v13, %v514_v10  ;;  %544 = vperm.xlu0 %797, %v487_v14   ;;  %v502_v17 = vsel %vm494_vm3, %v487_v14, 0.0  ;;  %800 = vset.pattern.permute.xlu1 %v877_v18 }
 0x1f4   :  { %v498_v19 = vrot.slane %v497_v15, 2  ;;  %v521_v7 = vsel %vm513_vm4, %v493_v63, 0.0  ;;  %v503_v20 = vrot.slane %v502_v17, 4  ;;  %549 = vperm.xlu1 %800, %v492_v5  }
 0x1f5   :  { %v517_v21 = vrot.slane %v516_v16, 2  ;;  %v522_v22 = vrot.slane %v521_v7, 4 }
 0x1f6   :  { %v499_v23 = vadd.f32 %v498_v19, %v497_v15  ;;  %v504_v24 = vadd.f32 %v503_v20, %v502_v17 }
 0x1f7   :  { %v518_v26 = vadd.f32 %v517_v21, %v516_v16  ;;  %v523_v27 = vadd.f32 %v522_v22, %v521_v7  ;;  %798 = vset.pattern.permute.xlu0 %v877_v18 }
 0x1f8   :  { %v500_v28 = vrot.slane %v499_v23, 1  ;;  %v505_v29 = vrot.slane %v504_v24, 2  ;;  %554 = vperm.xlu0 %798, %v493_v63   ;;  %801 = vset.pattern.permute.xlu1 %v876_v35 }
 0x1f9   :  { %v519_v30 = vrot.slane %v518_v26, 1  ;;  %v524_v31 = vrot.slane %v523_v27, 2 }
 0x1fa   :  { %v501_v32 = vadd.f32 %v500_v28, %v499_v23  ;;  %v506_v33 = vadd.f32 %v505_v29, %v504_v24 }
 0x1fb   :  { %v525_v34 = vadd.f32 %v524_v31, %v523_v27  ;;  %v520_v37 = vadd.f32 %v519_v30, %v518_v26 }
 0x1fc   :  { %813 = vrcp.f32 %v501_v32  ;;  %v507_v36 = vrot.slane %v506_v33, 1  ;;  %802 = vset.pattern.permute.xlu0 %v876_v35  ;;  %v533_v35 = vand.u32 127, %v59_v62 }
 0x1fd   :  { %v526_v38 = vrot.slane %v525_v34, 1 }
 0x1fe   :  { %v508_v39 = vadd.f32 %v507_v36, %v506_v33  ;;  %vm534_vm5 = vcmp.lt.s32.totalorder %v533_v35, 32 }
 0x1ff   :  { %v527_v40 = vadd.f32 %v526_v38, %v525_v34 }
 0x200   :  { %815 = vrcp.f32 %v508_v39 }
 0x201   :  { %817 = vrcp.f32 %v520_v37 }
 0x202   :  { %819 = vrcp.f32 %v527_v40 }
 0x206   :  { %v814_v41 = vpop.eup %813 }
 0x207   :  { %578 = vperm.xlu1 %801, %v814_v41  }
 0x20a   :  { %v816_v42 = vpop.eup %815 }
 0x20b   :  { %v818_v43 = vpop.eup %817  ;;  %582 = vperm.xlu0 %802, %v816_v42   ;;  %803 = vset.pattern.permute.xlu1 %v877_v18 }
 0x20c   :  { %586 = vperm.xlu1 %803, %v818_v43   ;;  %v820_v44 = vpop.eup %819 }
 0x20f   :  { %804 = vset.pattern.permute.xlu0 %v877_v18 }
 0x210   :  { %590 = vperm.xlu1 %803, %v820_v44  }
 0x26e   :  { %v540_v45 = vpop.permute.xlu1 %539 }
 0x272   :  { %v545_v46 = vpop.permute.xlu0 %544 }
 0x273   :  { %v550_v47 = vpop.permute.xlu1 %549 }
 0x274   :  { %v557_v48 = vsel %vm534_vm5, %v540_v45, %v550_v47 }
 0x275   :  { %v559_v52 = vmul.f32 %v557_v48, %v968_v25 }
 0x277   :  { %v555_v49 = vpop.permute.xlu0 %554  ;;  %v562_v55 = vsel %vm561_vm6, %v559_v52, 0.0 }
 0x278   :  { %v558_v51 = vsel %vm534_vm5, %v545_v46, %v555_v49  ;;  %v563_v57 = vrot.slane %v562_v55, 4 }
 0x279   :  { %v560_v53 = vmul.f32 %v558_v51, %v1032_v50 }
 0x27a   :  { %v564_v59 = vadd.f32 %v563_v57, %v562_v55 }
 0x27b   :  { %v569_v54 = vsel %vm561_vm6, %v560_v53, 0.0 }
 0x27c   :  { %v570_v56 = vrot.slane %v569_v54, 4  ;;  %v565_v61 = vrot.slane %v564_v59, 2 }
 0x27e   :  { %v571_v58 = vadd.f32 %v570_v56, %v569_v54  ;;  %v566_v2 = vadd.f32 %v565_v61, %v564_v59 }
 0x280   :  { %v572_v62 = vrot.slane %v571_v58, 2  ;;  %v567_v50 = vrot.slane %v566_v2, 1 }
 0x282   :  { %v573_v0 = vadd.f32 %v572_v62, %v571_v58  ;;  %v568_v11 = vadd.f32 %v567_v50, %v566_v2 }
 0x284   :  { %v574_v4 = vrot.slane %v573_v0, 1 }
 0x286   :  { %v579_v60 = vpop.permute.xlu1 %578  ;;  %v575_v10 = vadd.f32 %v574_v4, %v573_v0 }
 0x28a   :  { %v583_v3 = vpop.permute.xlu0 %582 }
 0x28b   :  { %v587_v1 = vpop.permute.xlu1 %586  ;;  %v593_v25 = vsel %vm592_vm7, %v583_v3, %v579_v60 }
 0x28f   :  { %v591_v5 = vpop.permute.xlu1 %590 }
 0x290   :  { %v595_v6 = vsel %vm592_vm7, %v591_v5, %v587_v1 }
 0x291   :  { %v597_v8 = vsel %vm534_vm5, %v593_v25, %v595_v6 }
 0x292   :  { %v599_v9 = vrot.slane %v597_v8, 1  ;;  %v602_v13 = vmul.f32 %v597_v8, %v568_v11 }
 0x294   :  { %v603_v12 = vmul.f32 %v599_v9, %v575_v10 }
 0x296   :  { %v606_v14 = vrot.slane %v603_v12, 7 }
 0x298   :  { %v607_v15 = vsel %vm592_vm7, %v606_v14, %v602_v13 }
 0x299   :  { %610 = vst.msk [vmem:[#allocation7] sm:$0x3] %vm609_vm8, %v607_v15 }
 0x29a   :  { %856 = shalt.err (!%p853_p0)
}
 0x29b   :  { %s857_s8 = scalar_lea.hbm %s1225_s5, 32 }
 0x29c   :  { %p858_p1 = scmp.ne.s32.totalorder %s1225_s5, %s857_s8  ;;  %p861_p2 = scmp.lt.u32.totalorder %s857_s8, %s1225_s5 }
 0x29e   :  { %p863_p3 = pnand %p861_p2, %p858_p1 }
 0x2a0   :  { %866 = shalt.err (!%p863_p3)
}
 0x2a1   :  { %620 = dma.vmem_to_hbm [thread:$0]  %s618_s30, 32, %s1225_s5, [#allocation5]  }
 0x2a2   :  { %871 = dma.done.wait [#allocation5], 32  }
 0x2a3   :  { %872 = vsyncadd [#allocation5], 4294967264 }
 0x2a4   :  { %624 = vsyncpa [#allocation5], 1 }
 0x2a5   :  { %625 = vsyncpa [#allocation6], 1 }

</bundles_post_ra>
